<compile_context>
chip_gen: v6e
topology: v6e:2x2x1
jax: 0.10.0
libtpu: 0.0.40
codegen_flags: <defaults>
</compile_context>

<pallas_src>
import functools

import jax
import jax.numpy as jnp
import numpy as np
from jax.experimental import pallas as pl
from jax.experimental.pallas import tpu as pltpu

_LANE = 128
_SUBLANE = 8


# ----------------------------------------------------------------------------
# Helpers
# ----------------------------------------------------------------------------
def _row_mult(dtype) -> int:
    """Sublane multiple for a dtype (8 for 4-byte, 16 for 2-byte, 32 for 1-byte)."""
    return _SUBLANE * max(1, 4 // np.dtype(dtype).itemsize)


def _largest_divisor_tile(n: int, target: int, multiple: int) -> int:
    """Largest divisor of n that is a multiple of `multiple` and <= max(target, multiple).

    Falls back to the full extent n (always a legal block dim) if none exists.
    """
    if n % multiple != 0:
        return n
    target = max(target, multiple)
    t = min(n, (target // multiple) * multiple)
    while t >= multiple:
        if n % t == 0:
            return t
        t -= multiple
    return n


def _device_kind() -> str:
    try:
        return jax.devices()[0].device_kind.lower()
    except Exception:  # pragma: no cover - defensive
        return ""


def _vmem_limit_bytes(estimate: int) -> int:
    """Generation-aware VMEM request: leave headroom for compiler scratch."""
    kind = _device_kind()
    phys = (64 << 20) if "7" in kind else (128 << 20)   # v7x: 64 MiB/TC; v4/v5/v6: 128 MiB
    cap = (phys * 3) // 4                               # ~48 MiB on v7x, ~96 MiB otherwise
    return int(min(max(estimate + (8 << 20), 32 << 20), cap))


# ----------------------------------------------------------------------------
# Kernels
# ----------------------------------------------------------------------------
def _xs_repeat_kernel(x_ref, o_ref, *, factor):
    """x_ref: (1, rows, D) -> o_ref: (1, rows, F*D): F lane-concatenated copies.

    Direct slice stores (no concatenate temporary).  The wrapper only takes this
    path when D % 128 == 0, so every store is lane-dense.  The wrapper's row-major
    reshape (B, T, F*D) -> (B, T*F, D) IS the time-axis repeat_interleave.
    """
    d = x_ref.shape[-1]
    x = x_ref[0]
    for k in range(factor):
        o_ref[0, :, pl.ds(k * d, d)] = x


def _attn_repeat_kernel(m_ref, r1_ref, o_ref, *, factor, tc, n_copies):
    """Column-repeat (dim=2) via a tiny exact one-hot selection matmul.

    m_ref : (1, rows, mc)            mask slice, mc = n_inner * tc columns
    r1_ref: (tc, tc*factor)          one-hot block r1[s, c] = (c // factor == s)
    o_ref : (1, rows, n_copies*mc*factor)

    out[:, k*mc*F + s*tc*F + u] = m[:, s*tc + u//F]  -- exact for 0/1 masks since
    each output element is a single 0/1-weighted term.  The row repeat (dim=1)
    comes from the n_copies lane-concatenated copies + the wrapper reshape.
    """
    mc = m_ref.shape[-1]
    n_inner = mc // tc
    width = tc * factor
    out_is_bool = o_ref.dtype == jnp.bool_
    r1 = r1_ref[...]
    acc_t = jnp.int32 if jnp.issubdtype(r1.dtype, jnp.integer) else jnp.float32
    for s in range(n_inner):
        x = m_ref[0, :, pl.ds(s * tc, tc)]
        if x.dtype != r1.dtype:
            x = x.astype(r1.dtype)          # bool/int cast folded into the kernel
        cols = jnp.dot(x, r1, preferred_element_type=acc_t)
        val = (cols != 0) if out_is_bool else cols.astype(o_ref.dtype)
        for k in range(n_copies):
            o_ref[0, :, pl.ds((k * n_inner + s) * width, width)] = val


# ----------------------------------------------------------------------------
# attn_masks upsampling (Pallas)
# ----------------------------------------------------------------------------
def _attn_upsample_pallas(attn, factor, mxu_dtype):
    """attn: (B, T, T) bool/int -> (B, T*F, T*F), same dtype, via one pallas_call."""
    B, T, _ = attn.shape
    F = int(factor)
    TF = T * F
    io_dtype = attn.dtype
    io_item = np.dtype(io_dtype).itemsize

    at = _largest_divisor_tile(T, 512, _row_mult(io_dtype))
    if T % _LANE == 0:
        # Block-diagonal formulation: column grid over the F*T*F-wide output; each
        # step needs only an (at, mc) mask slice and the tiny (128, 128*F) one-hot.
        tc = _LANE
        mc = _largest_divisor_tile(T, (2 << 20) // max(1, at * F * io_item), _LANE)
        n_copies = 1
    else:
        # Degenerate small/odd-T fallback: full-width blocks (always legal).
        tc = T
        mc = T
        n_copies = F
    TN = n_copies * mc * F                      # output block width (lane-dense or full)
    n_mask_col_blocks = T // mc
    n_col_blocks = (F * TF) // TN

    # One-hot column-repeat block; 0/1 values are exact in int8 / bf16.
    r1 = (jnp.arange(tc * F)[None, :] // F == jnp.arange(tc)[:, None]).astype(mxu_dtype)

    est = (2 * at * mc * io_item                       # mask block (double-buffered)
           + 2 * tc * tc * F * np.dtype(mxu_dtype).itemsize
           + 2 * at * TN * io_item                     # output block (double-buffered)
           + at * tc * F * 4)                          # accumulator temporaries

    wide = pl.pallas_call(
        functools.partial(_attn_repeat_kernel, factor=F, tc=tc, n_copies=n_copies),
        out_shape=jax.ShapeDtypeStruct((B, T, F * TF), io_dtype),
        grid=(B, T // at, n_col_blocks),
        in_specs=[
            pl.BlockSpec((1, at, mc), lambda b, i, j: (b, i, j % n_mask_col_blocks)),
            # Tiny, constant-index one-hot block: stays VMEM-resident across the grid.
            pl.BlockSpec((tc, tc * F), lambda b, i, j: (0, 0)),
        ],
        out_specs=pl.BlockSpec((1, at, TN), lambda b, i, j: (b, i, j)),
        compiler_params=pltpu.CompilerParams(
            dimension_semantics=("parallel", "parallel", "parallel"),
            vmem_limit_bytes=_vmem_limit_bytes(est)),
    )(attn, r1)
    # Row-major reshape (B, T, F*T*F) -> (B, T*F, T*F) is the row repeat (free).
    return wide.reshape(B, TF, TF)


# ----------------------------------------------------------------------------
# Wrapper (module forward)
# ----------------------------------------------------------------------------
def upsampling_pixel(xs, x_lens, attn_masks, conv_masks, factor):
    B, T, D = xs.shape
    F = int(factor)
    TF = T * F

    # x_lens: trivial scalar glue.
    # TODO(synk): torch casts to int64; JAX x64 is disabled by default, so int32 is
    # returned here (identical values for realistic sequence lengths).
    x_lens_out = (x_lens * F).astype(jnp.int32)

    if F == 1:
        return xs, x_lens_out, attn_masks, conv_masks

    # ---- xs: repeat_interleave along dim=1 (lane-dense slice stores) --------
    if D % _LANE == 0:
        x_item = np.dtype(xs.dtype).itemsize
        xt = _largest_divisor_tile(
            T, (4 << 20) // max(1, D * (1 + F) * x_item), _row_mult(xs.dtype))
        est = 2 * xt * D * (1 + F) * x_item
        xs_wide = pl.pallas_call(
            functools.partial(_xs_repeat_kernel, factor=F),
            out_shape=jax.ShapeDtypeStruct((B, T, F * D), xs.dtype),
            grid=(B, T // xt),
            in_specs=[pl.BlockSpec((1, xt, D), lambda b, i: (b, i, 0))],
            out_specs=pl.BlockSpec((1, xt, F * D), lambda b, i: (b, i, 0)),
            compiler_params=pltpu.CompilerParams(
                dimension_semantics=("parallel", "parallel"),
                vmem_limit_bytes=_vmem_limit_bytes(est)),
        )(xs)
        xs_out = xs_wide.reshape(B, TF, D)
    else:
        # Lane-sparse D -> masked partial stores in Pallas; pure memory movement,
        # so plain XLA is the right fallback (per review).
        xs_out = jnp.repeat(xs, F, axis=1)

    # ---- attn_masks: repeat_interleave along dims 1 and 2 -------------------
    mask_dtype = attn_masks.dtype
    attn_out = None
    if jnp.issubdtype(mask_dtype, jnp.floating):
        # Float (e.g. additive -inf) masks: 0 * (-inf) = NaN in the selection matmul,
        # so keep exact semantics via XLA.
        attn_out = jnp.repeat(jnp.repeat(attn_masks, F, axis=1), F, axis=2)
    else:
        kind = _device_kind()
        if mask_dtype in (jnp.bool_, jnp.int8):
            # int MXU on v5*/v6* (exact for 0/1); v7x has no int MXU -> bf16.
            mxu_dtype = jnp.int8 if ("v5" in kind or "v6" in kind) else jnp.bfloat16
        else:
            mxu_dtype = jnp.float32      # exact single-term selection for integer masks
        try:
            # Preferred: native mask dtype at the kernel boundary (casts folded in-kernel,
            # no extra HBM pass over the largest tensor).
            attn_out = _attn_upsample_pallas(attn_masks, F, mxu_dtype)
        except Exception:
            attn_out = None
        if attn_out is None and mask_dtype == jnp.bool_:
            try:
                # Conservative fallback: int8 boundary + bf16 MXU (one cheap input cast
                # over the small tensor, one output cast).
                attn_out = _attn_upsample_pallas(
                    attn_masks.astype(jnp.int8), F, jnp.bfloat16).astype(jnp.bool_)
            except Exception:
                attn_out = None
        if attn_out is None:
            attn_out = jnp.repeat(jnp.repeat(attn_masks, F, axis=1), F, axis=2)

    # ---- conv_masks: only B*T*F elements -> plain JAX (per review) ----------
    conv_out = jnp.repeat(conv_masks, F, axis=1)

    return xs_out, x_lens_out, attn_out, conv_out


# ----------------------------------------------------------------------------
# Example / self-check
# ----------------------------------------------------------------------------
def _run_case(B, T, D, factor, seed):
    key = jax.random.PRNGKey(seed)
    xs = jax.random.normal(key, (B, T, D), dtype=jnp.float32)
    x_lens = jnp.array([T, max(1, T - T // 3)], dtype=jnp.int32)[:B]

    t_idx = jnp.arange(T)
    conv_masks = t_idx[None, :] < x_lens[:, None]                   # (B, T) bool
    attn_masks = conv_masks[:, :, None] & conv_masks[:, None, :]    # (B, T, T) bool

    outs = upsampling_pixel(xs, x_lens, attn_masks, conv_masks, factor)
    xs_o, lens_o, attn_o, conv_o = jax.block_until_ready(outs)

    # Pure-JAX reference (same semantics as torch.repeat_interleave).
    xs_ref = jnp.repeat(xs, factor, axis=1)
    attn_ref = jnp.repeat(jnp.repeat(attn_masks, factor, axis=1), factor, axis=2)
    conv_ref = jnp.repeat(conv_masks, factor, axis=1)
    lens_ref = (x_lens * factor).astype(jnp.int32)

    assert xs_o.shape == (B, T * factor, D) and xs_o.dtype == xs.dtype
    assert attn_o.shape == (B, T * factor, T * factor) and attn_o.dtype == attn_masks.dtype
    assert conv_o.shape == (B, T * factor) and conv_o.dtype == conv_masks.dtype
    assert bool(jnp.array_equal(xs_o, xs_ref))
    assert bool(jnp.array_equal(attn_o, attn_ref))
    assert bool(jnp.array_equal(conv_o, conv_ref))
    assert bool(jnp.array_equal(lens_o, lens_ref))


if __name__ == "__main__":
    # Lane-aligned case: exercises both Pallas kernels on their fast paths.
    _run_case(B=2, T=128, D=128, factor=2, seed=0)
    # Small / unaligned case: exercises the degenerate full-width path + XLA fallbacks.
    _run_case(B=2, T=8, D=32, factor=2, seed=1)
    print("KERNEL_OK")
</pallas_src>

<mosaic_0001>
module attributes {stable_mosaic.version = 11 : i64} {
  func.func @_xs_repeat_kernel(%arg0: i32, %arg1: i32, %arg2: memref<1x128x128xf32, #tpu.memory_space<vmem>>, %arg3: memref<1x128x256xf32, #tpu.memory_space<vmem>>) attributes {dimension_semantics = [#tpu.dimension_semantics<parallel>, #tpu.dimension_semantics<parallel>], iteration_bounds = array<i64: 2, 1>, scalar_prefetch = 0 : i64, scratch_operands = 0 : i64, tpu.core_type = #tpu.core_type<tc>, window_params = [{transform_indices = @transform_0, window_bounds = array<i64: 1, 128, 128>}, {transform_indices = @transform_1, window_bounds = array<i64: 1, 128, 256>}]} {
    %c0 = arith.constant 0 : index
    %c0_0 = arith.constant 0 : index
    %c0_1 = arith.constant 0 : index
    %0 = vector.load %arg2[%c0, %c0_0, %c0_1] : memref<1x128x128xf32, #tpu.memory_space<vmem>>, vector<1x128x128xf32>
    %1 = vector.shape_cast %0 : vector<1x128x128xf32> to vector<128x128xf32>
    %c0_2 = arith.constant 0 : index
    %c0_3 = arith.constant 0 : index
    %c0_4 = arith.constant 0 : index
    %2 = vector.load %arg3[%c0_2, %c0_3, %c0_4] : memref<1x128x256xf32, #tpu.memory_space<vmem>>, vector<1x128x128xf32>
    %3 = vector.shape_cast %2 : vector<1x128x128xf32> to vector<128x128xf32>
    %4 = vector.shape_cast %1 : vector<128x128xf32> to vector<1x128x128xf32>
    tpu.vector_store %arg3[%c0_2, %c0_3, %c0_4], %4 {strides = array<i32>} : memref<1x128x256xf32, #tpu.memory_space<vmem>>, vector<1x128x128xf32>,
    %c0_5 = arith.constant 0 : index
    %c0_6 = arith.constant 0 : index
    %c128 = arith.constant 128 : index
    %5 = vector.load %arg3[%c0_5, %c0_6, %c128] : memref<1x128x256xf32, #tpu.memory_space<vmem>>, vector<1x128x128xf32>
    %6 = vector.shape_cast %5 : vector<1x128x128xf32> to vector<128x128xf32>
    %7 = vector.shape_cast %1 : vector<128x128xf32> to vector<1x128x128xf32>
    tpu.vector_store %arg3[%c0_5, %c0_6, %c128], %7 {strides = array<i32>} : memref<1x128x256xf32, #tpu.memory_space<vmem>>, vector<1x128x128xf32>,
    return
  }
  func.func @transform_0(%arg0: i32, %arg1: i32) -> (i32, i32, i32) {
    %c0_i32 = arith.constant 0 : i32
    %c0_i32_0 = arith.constant 0 : i32
    return %arg0, %arg1, %c0_i32 : i32, i32, i32
  }
  func.func @transform_1(%arg0: i32, %arg1: i32) -> (i32, i32, i32) {
    %c0_i32 = arith.constant 0 : i32
    %c0_i32_0 = arith.constant 0 : i32
    return %arg0, %arg1, %c0_i32 : i32, i32, i32
  }
}

</mosaic_0001>

<bundles_post_ra>
// kernel: tpu_custom_call.1
= control target key start
LH: loop header
LB: loop body
LE: loop exit
PB: predicated region body
PF: predicated region fallthrough
CT: control target
= control target key end

     0   :  { %6 = vsyncpa [#allocation3], 0  ;;  %s720_s0 = inlined_call_operand.hbm [shape: f32[2,128,128], index: 0, kind: input, shape index: {}]   ;;  %s721_s1 = inlined_call_operand.hbm [shape: f32[2,128,256], index: 1, kind: output, shape index: {}]  }
   0x1   :  { %8 = vsyncpa [#allocation3 + $0x1], 0 }
   0x2   :  { %9 = vsyncpa [#allocation4], 0 }
   0x3   :  { %11 = vsyncpa [#allocation4 + $0x1], 0  ;;  %s516_s6 = smov 0   ;;  %s518_s7 = smov 0  }
   0x4   :  { %s520_s8 = smov 0   ;;  %s522_s9 = smov 0  }
   0x5   :  { %s524_s10 = smov 0   ;;  %s526_s11 = smov 0  }
   0x6 LB: > { %s307_s12 = sadd.s32 4294967295, %s498_s11   ;;  %s308_s13 = sadd.s32 4294967294, %s498_s11   ;;  %s498_s11 = sphi %s526_s11, %s17_s11   ;;  %s494_s10 = sphi %s524_s10, %s732_s10   ;;  %s490_s9 = sphi %s522_s9, %s731_s9   ;;  %s486_s8 = sphi %s520_s8, %s730_s8   ;;  %s482_s7 = sphi %s518_s7, %s729_s7   ;;  %s478_s6 = sphi %s516_s6, %s728_s6  }
   0x7   : > { %s29_s14 = sadd.s32 1, %s494_s10  ;;  %s38_s15 = sadd.s32 1, %s486_s8 }
   0x8   : > { %p31_p0 = scmp.ge.s32.totalorder %s29_s14, 2  ;;  %p45_p1 = scmp.ne.s32.totalorder %s486_s8, %s482_s7 }
   0x9   : > { %p46_p2 = scmp.eq.s32.totalorder %s498_s11, 0  ;;  %p51_p3 = scmp.ne.s32.totalorder %s482_s7, %s478_s6 }
   0xa   : > { %s734_s14 = smov (%p31_p0, %s29_s14), 0  ;;  %p52_p5 = scmp.eq.s32.totalorder %s307_s12, 0 }
   0xb   : > { %p557_p4 = por %p46_p2, %p45_p1  ;;  %s33_s17 = ssub.s32 %s494_s10, %s734_s14 }
   0xc   : > { %p77_p6 = scmp.eq.s32.totalorder %s307_s12, 1  ;;  %p36_p7 = scmp.eq.s32.totalorder %s33_s17, 0 }
   0xd   : > { %p563_p8 = por %p52_p5, %p51_p3  ;;  %p83_p10 = scmp.eq.s32.totalorder %s308_s13, 1 }
   0xe   : > { %p567_p9 = por %p77_p6, %p45_p1  ;;  %p336_p13 = scmp.lt.s32.totalorder %s498_s11, 2 }
   0xf   : > { %s572_s20 = scalar_select %p36_p7, %s486_s8, %s38_s15  }
  0x10   : > { %p574_p11 = por %p83_p10, %p51_p3  ;;  %s103_s22 = sand.u32 1, %s486_s8  }
  0x11   : > { %s311_s23 = sshll.u32 %s103_s22, 7  ;;  %s322_s24 = sshll.u32 %s494_s10, 11 }
  0x12   : > { %s115_s27 = scalar_lea.hbm %s720_s0, %s322_s24  ;;  %s107_s28 = scalar_lea.vmem [#allocation2], %s311_s23 }
  0x13   : > { %s116_s29 = sshll.u32 %s107_s28, 4  ;;  %p587_p0 = pnand %p336_p13, %p557_p4  ;;  %s117_s29 = int_to_ptr.vmem [resolvable:$true] %s116_s29 }
  0x14   : > { %p314_p1 = scmp.ge.s32.totalorder %s498_s11, 1  ;;  %s104_s2 = scalar_lea.sflag [#allocation3], %s103_s22 }
  0x15   : > { %p392_p2 = pneg %p587_p0  ;;  %s403_s3 = scalar_lea.vmem %s117_s29, 2048 }
  0x16   : > { %p404_p3 = scmp.ne.s32.totalorder %s117_s29, %s403_s3  ;;  %s500_s4 = smov [#allocation2]  }
  0x17   : > { %s408_s5 = sshll.u32 %s500_s4, 4  ;;  %s409_s5 = int_to_ptr.vmem [resolvable:$false] %s408_s5 }
  0x18   : > { %p406_p5 = pnand %p404_p3, %p392_p2  ;;  %s410_s12 = scalar_lea.vmem %s409_s5, 4096 }
  0x19   : > { %p411_p7 = scmp.lt.s32.totalorder %s117_s29, %s409_s5  ;;  %p412_p10 = scmp.lt.s32.totalorder %s410_s12, %s403_s3 }
  0x1a   : > { %p407_p6 = pneg %p406_p5 }
  0x1b   : > { %p413_p12 = por %p412_p10, %p411_p7 }
  0x1d   : > { %p414_p4 = pnand %p413_p12, %p407_p6 }
  0x1f   : > { %417 = shalt.err (!%p414_p4)
}
  0x20   : > { %s501_s13 = smov 128   ;;  %s502_s15 = smov 8  }
  0x21   : > { %331 = dma.hbm_to_vmem [thread:$0]  (!%p587_p0), %s115_s27, 2048, %s117_s29, %s104_s2, %s501_s13, %s501_s13, %s502_s15  }
  0x22   : > { %p124_p13 = scmp.lt.s32.totalorder %s498_s11, 3 }
  0x24   : > { %p125_p2 = pnand %p314_p1, %p124_p13 }
  0x25   : > { %s600_s16 = sand.u32 (!%p125_p2), 1, %s482_s7  }
  0x26   : > { %128 = sbr.rel (%p125_p2) target bundleno = 75 (0x4b), region = 24  ;;  %s315_s17 = sshll.u32 (!%p125_p2), %s600_s16, 7 }
  0x27   : > { %s131_s22 = scalar_lea.sflag (!%p125_p2), [#allocation3], %s600_s16  ;;  %s604_s23 = scalar_lea.vmem (!%p125_p2), [#allocation2], %s315_s17 }
  0x2b   : > { %469 = dma.done.wait (%p563_p8), %s131_s22, 2048  }
  0x2c   : > { %471 = vsyncadd (%p563_p8), %s131_s22, 4294965248  ;;  %s316_s24 = sshll.u32 %s600_s16, 8  ;;  %v155_v0 = vld [vmem:[%s604_s23] sm:$0xff]  ;;  %v156_v1 = vld [vmem:[%s604_s23 + $0x8] sm:$0xff]  ;;  %s323_s25 = sshll.u32 %s490_s9, 12 }
  0x2d   : > { %v157_v2 = vld [vmem:[%s604_s23 + $0x10] sm:$0xff]  ;;  %s615_s26 = scalar_lea.vmem [#allocation5], %s316_s24  ;;  %v158_v3 = vld [vmem:[%s604_s23 + $0x18] sm:$0xff]  ;;  %v159_v4 = vld [vmem:[%s604_s23 + $0x20] sm:$0xff]  ;;  %s650_s29 = scalar_lea.hbm %s721_s1, %s323_s25 }
  0x2e   : > { %s220_s18 = sshll.u32 %s615_s26, 4  ;;  %171 = vst [vmem:[%s615_s26] sm:$0xff] %v155_v0  ;;  %187 = vst [vmem:[%s615_s26 + $0x8] sm:$0xff] %v155_v0  ;;  %v160_v5 = vld [vmem:[%s604_s23 + $0x28] sm:$0xff]  ;;  %v161_v6 = vld [vmem:[%s604_s23 + $0x30] sm:$0xff]  ;;  %s204_s9 = scalar_lea.sflag [#allocation4], %s600_s16  ;;  %s654_s18 = int_to_ptr.vmem [resolvable:$true] %s220_s18 }
  0x2f   : > { %172 = vst [vmem:[%s615_s26 + $0x10] sm:$0xff] %v156_v1  ;;  %188 = vst [vmem:[%s615_s26 + $0x18] sm:$0xff] %v156_v1  ;;  %v162_v7 = vld [vmem:[%s604_s23 + $0x38] sm:$0xff]  ;;  %v163_v8 = vld [vmem:[%s604_s23 + $0x40] sm:$0xff]  ;;  %s418_s30 = scalar_lea.vmem %s654_s18, 4096  ;;  %s503_s2 = smov [#allocation5]  }
  0x30   : > { %173 = vst [vmem:[%s615_s26 + $0x20] sm:$0xff] %v157_v2  ;;  %189 = vst [vmem:[%s615_s26 + $0x28] sm:$0xff] %v157_v2  ;;  %v164_v9 = vld [vmem:[%s604_s23 + $0x48] sm:$0xff]  ;;  %v165_v10 = vld [vmem:[%s604_s23 + $0x50] sm:$0xff]  ;;  %p419_p8 = scmp.ne.s32.totalorder %s654_s18, %s418_s30  ;;  %s422_s3 = sshll.u32 %s503_s2, 4  ;;  %s423_s3 = int_to_ptr.vmem [resolvable:$false] %s422_s3 }
  0x31   : > { %174 = vst [vmem:[%s615_s26 + $0x30] sm:$0xff] %v158_v3  ;;  %190 = vst [vmem:[%s615_s26 + $0x38] sm:$0xff] %v158_v3  ;;  %v166_v11 = vld [vmem:[%s604_s23 + $0x58] sm:$0xff]  ;;  %v167_v12 = vld [vmem:[%s604_s23 + $0x60] sm:$0xff]  ;;  %s424_s4 = scalar_lea.vmem %s423_s3, 8192  ;;  %p425_p1 = scmp.lt.s32.totalorder %s654_s18, %s423_s3 }
  0x32   : > { %175 = vst [vmem:[%s615_s26 + $0x40] sm:$0xff] %v159_v4  ;;  %191 = vst [vmem:[%s615_s26 + $0x48] sm:$0xff] %v159_v4  ;;  %v168_v13 = vld [vmem:[%s604_s23 + $0x68] sm:$0xff]  ;;  %v169_v14 = vld [vmem:[%s604_s23 + $0x70] sm:$0xff]  ;;  %p420_p12 = pnand %p419_p8, %p567_p9  ;;  %p426_p3 = scmp.lt.s32.totalorder %s424_s4, %s418_s30 }
  0x33   : > { %176 = vst [vmem:[%s615_s26 + $0x50] sm:$0xff] %v160_v5  ;;  %192 = vst [vmem:[%s615_s26 + $0x58] sm:$0xff] %v160_v5  ;;  %v170_v15 = vld [vmem:[%s604_s23 + $0x78] sm:$0xff] }
  0x34   : > { %177 = vst [vmem:[%s615_s26 + $0x60] sm:$0xff] %v161_v6  ;;  %193 = vst [vmem:[%s615_s26 + $0x68] sm:$0xff] %v161_v6  ;;  %p421_p0 = pneg %p420_p12  ;;  %p427_p5 = por %p426_p3, %p425_p1 }
  0x35   : > { %178 = vst [vmem:[%s615_s26 + $0x70] sm:$0xff] %v162_v7  ;;  %194 = vst [vmem:[%s615_s26 + $0x78] sm:$0xff] %v162_v7 }
  0x36   : > { %179 = vst [vmem:[%s615_s26 + $0x80] sm:$0xff] %v163_v8  ;;  %195 = vst [vmem:[%s615_s26 + $0x88] sm:$0xff] %v163_v8  ;;  %p428_p6 = pnand %p427_p5, %p421_p0 }
  0x37   : > { %180 = vst [vmem:[%s615_s26 + $0x90] sm:$0xff] %v164_v9  ;;  %196 = vst [vmem:[%s615_s26 + $0x98] sm:$0xff] %v164_v9 }
  0x38   : > { %181 = vst [vmem:[%s615_s26 + $0xa0] sm:$0xff] %v165_v10  ;;  %197 = vst [vmem:[%s615_s26 + $0xa8] sm:$0xff] %v165_v10 }
  0x39   : > { %182 = vst [vmem:[%s615_s26 + $0xb0] sm:$0xff] %v166_v11  ;;  %198 = vst [vmem:[%s615_s26 + $0xb8] sm:$0xff] %v166_v11 }
  0x3a   : > { %183 = vst [vmem:[%s615_s26 + $0xc0] sm:$0xff] %v167_v12  ;;  %199 = vst [vmem:[%s615_s26 + $0xc8] sm:$0xff] %v167_v12 }
  0x3b   : > { %184 = vst [vmem:[%s615_s26 + $0xd0] sm:$0xff] %v168_v13  ;;  %200 = vst [vmem:[%s615_s26 + $0xd8] sm:$0xff] %v168_v13 }
  0x3c   : > { %185 = vst [vmem:[%s615_s26 + $0xe0] sm:$0xff] %v169_v14  ;;  %201 = vst [vmem:[%s615_s26 + $0xe8] sm:$0xff] %v169_v14 }
  0x3d   : > { %186 = vst [vmem:[%s615_s26 + $0xf0] sm:$0xff] %v170_v15  ;;  %202 = vst [vmem:[%s615_s26 + $0xf8] sm:$0xff] %v170_v15 }
  0x3e   : > { %431 = shalt.err (!%p428_p6)
}
  0x3f   : > { %s432_s5 = scalar_lea.hbm %s650_s29, 4096  ;;  %s436_s15 = scalar_lea.hbm %s721_s1, 8192 }
  0x40   : > { %p433_p7 = scmp.ne.s32.totalorder %s650_s29, %s432_s5  ;;  %p437_p13 = scmp.lt.s32.totalorder %s650_s29, %s721_s1 }
  0x41   : > { %p438_p2 = scmp.lt.s32.totalorder %s436_s15, %s432_s5 }
  0x42   : > { %p434_p10 = pnand %p433_p7, %p567_p9 }
  0x43   : > { %p439_p8 = por %p438_p2, %p437_p13 }
  0x44   : > { %p435_p4 = pneg %p434_p10 }
  0x46   : > { %p440_p12 = pnand %p439_p8, %p435_p4 }
  0x48   : > { %443 = shalt.err (!%p440_p12)
}
  0x49   : > { %s504_s23 = smov 256   ;;  %s505_s24 = smov 16  }
  0x4a   : > { %326 = dma.vmem_to_hbm [thread:$0]  (%p567_p9), %s654_s18, 4096, %s650_s29, %s204_s9, %s504_s23, %s504_s23, %s505_s24  }
  0x4b PF: > { %s235_s25 = sand.u32 1, %s478_s6   ;;  %p727_p0 = scmp.ge.s32.totalorder %s498_s11, 2 }
  0x4c   : > { %s236_s26 = scalar_lea.sflag [#allocation4], %s235_s25 }
  0x4d   : > { %p333_p1 = pnand %p727_p0, %p574_p11 }
  0x4f   : > { %p334_p3 = pneg %p333_p1 }
  0x51   : > { %473 = dma.done.wait (%p334_p3), %s236_s26, 4096  }
  0x52   : > { %475 = vsyncadd (%p334_p3), %s236_s26, 4294963200  ;;  %s17_s11 = sadd.s32 1, %s498_s11   ;;  %s728_s6 = smov %s482_s7 }
  0x53   : > { %p14_p5 = scmp.ge.s32.totalorder %s17_s11, 4   ;;  %s729_s7 = smov %s486_s8 }
  0x54   : > { %s730_s8 = smov %s572_s20  ;;  %s731_s9 = smov %s494_s10 }
  0x55   : > { %s732_s10 = smov %s734_s14  ;;  %16 = sbr.rel (!%p14_p5) target bundleno = 6 (0x6), region = 69 }
  0x5a   :  { %241 = vsyncpa [#allocation3], 1 }
  0x5b   :  { %243 = vsyncpa [#allocation3 + $0x1], 1 }
  0x5c   :  { %244 = vsyncpa [#allocation4], 1 }
  0x5d   :  { %246 = vsyncpa [#allocation4 + $0x1], 1 }

</bundles_post_ra>
